<compile_context>
chip_gen: v7x
topology: tpu7x:2x2x1
jax: 0.10.0
libtpu: 0.0.40
codegen_flags: <defaults>
</compile_context>

<pallas_src>
import functools

import jax
import jax.numpy as jnp
import numpy as np
from jax.experimental import pallas as pl
from jax.experimental.pallas import tpu as pltpu


# -----------------------------------------------------------------------------
# Fused per-batch-element kernel (one grid step == one batch element)
# -----------------------------------------------------------------------------
def _fused_forward_kernel(x_ref, ewt_ref, wstk_ref, bias_ref, shift_ref,
                          sc_ref, pt_ref, swt_ref, o_ref, *,
                          n_stages, taps_per_stage, slope, C):
    """Refs:
      x      (1, T, Fin)                 one batch element
      ewt    (Fin, C)                    expand weight (BN scale folded in)
      wstk   (n_stages*sum(ks), C, C)    all conv tap weights (BN scale folded)
      bias   (2, W)                      row0: expand shift, row1: shrink bias
      shift  (n_stages, nb*T, C)         per-stage stacked BN shifts (+conv bias)
      sc     (nb*T, sum(ks)*T)           block-diag 0/1 tap-fold matrix
      pt     (T, nb*T)                   stride + adaptive_avg_pool1d + branch sum
      swt    (C, W)                      shrink weight (zero padded to W lanes)
      out    (1, T, W)
    """
    def leaky(v):
        return jnp.maximum(v, slope * v)

    x = x_ref[0]                                               # (T, Fin)

    # expand 1x1 conv (+folded BN) + LeakyReLU.  Dropout = identity in eval.
    h = leaky(jnp.dot(x, ewt_ref[...], preferred_element_type=jnp.float32)
              + bias_ref[0:1, 0:C])                            # (T, C)

    for stage in range(n_stages):
        base = stage * taps_per_stage
        # per-tap products against the SAME h (all branches of the stage)
        g = [jnp.dot(h, wstk_ref[base + j], preferred_element_type=jnp.float32)
             for j in range(taps_per_stage)]
        gcat = jnp.concatenate(g, axis=0)                      # (sum(ks)*T, C), sublane aligned
        # tap row-shifts + per-tap accumulation for every branch: one MXU pass
        acc = jnp.dot(sc_ref[...], gcat,
                      preferred_element_type=jnp.float32)      # (nb*T, C)
        z = leaky(acc + shift_ref[stage])                      # folded BN shift (+conv bias)
        # conv stride + adaptive_avg_pool1d(->T) + valid-row mask + branch sum
        h = jnp.dot(pt_ref[...], z, preferred_element_type=jnp.float32)   # (T, C)

    # shrink 1x1 conv (+bias); output channels zero-padded to W lanes
    y = (jnp.dot(h, swt_ref[...], preferred_element_type=jnp.float32)
         + bias_ref[1:2, :])
    o_ref[0] = y.astype(o_ref.dtype)


# -----------------------------------------------------------------------------
# Wrapper: batch-parallel grid, all packed weights resident in VMEM
# -----------------------------------------------------------------------------
def pooling_net_forward(x, kparams, cfg):
    """x: (B, T, in_features) -> {'fullpose_6d': (B, T, out_features)}."""
    B, T, Fin = x.shape
    C, Fout = cfg["channel"], cfg["out_features"]
    ks = tuple(cfg["kernel_size_set"])
    n_stages = cfg["stage_number"]
    W = kparams["shrink_wt"].shape[1]

    operands = [x, kparams["expand_wt"], kparams["w_stack"], kparams["bias2"],
                kparams["shift_full"], kparams["sc_all"], kparams["pt_wide"],
                kparams["shrink_wt"]]

    def whole(a):
        # full-array block, same block every grid step (DMA'd once, stays resident)
        return pl.BlockSpec(a.shape, lambda b, _nd=a.ndim: (0,) * _nd)

    in_specs = ([pl.BlockSpec((1, T, Fin), lambda b: (b, 0, 0))]
                + [whole(a) for a in operands[1:]])

    y_pad = pl.pallas_call(
        functools.partial(_fused_forward_kernel,
                          n_stages=n_stages, taps_per_stage=sum(ks),
                          slope=0.01, C=C),
        grid=(B,),
        in_specs=in_specs,
        out_specs=pl.BlockSpec((1, T, W), lambda b: (b, 0, 0)),
        out_shape=jax.ShapeDtypeStruct((B, T, W), jnp.float32),
        compiler_params=pltpu.CompilerParams(
            dimension_semantics=("parallel",)),
    )(*operands)
    return {"fullpose_6d": y_pad[..., :Fout]}


# -----------------------------------------------------------------------------
# Host-side constant matrices
# -----------------------------------------------------------------------------
def _tap_fold_matrix(T, ks):
    """(nb*T, sum(ks)*T) block-diagonal 0/1 matrix.  Row ci*T + i sums, for
    branch ci, the per-tap products at rows i+tap.  Replaces the old
    sublane-misaligned slices h[tap:tap+Lv] and the per-tap add chain."""
    nb, tot = len(ks), sum(ks)
    m = np.zeros((nb * T, tot * T), dtype=np.float32)
    col0 = 0
    for ci, k in enumerate(ks):
        for tap in range(k):
            for i in range(T):
                if i + tap < T:
                    m[ci * T + i, (col0 + tap) * T + i + tap] = 1.0
        col0 += k
    return jnp.asarray(m)


def _pool_branchcat_matrix(T, ks, ss):
    """(T, nb*T): per branch, folds conv stride + adaptive_avg_pool1d(Lc -> T)
    + valid-row masking into one matrix; the horizontal concat also performs
    the stage's branch sum inside the same matmul.  Per-batch-element (no
    quadratic (B*T)^2 blow-up)."""
    nb = len(ks)
    pt = np.zeros((T, nb * T), dtype=np.float32)
    for ci, (k, s) in enumerate(zip(ks, ss)):
        Lc = (T - k) // s + 1
        for i in range(T):
            st = (i * Lc) // T
            en = -((-(i + 1) * Lc) // T)          # ceil((i+1)*Lc/T)
            for j in range(st, en):
                pt[i, ci * T + j * s] += 1.0 / (en - st)
    return jnp.asarray(pt)


# -----------------------------------------------------------------------------
# Deterministic synthetic params (shapes follow the nn.Module __init__)
# -----------------------------------------------------------------------------
def init_params(key, cfg):
    Fin, Fout, C = cfg["in_features"], cfg["out_features"], cfg["channel"]
    ks = cfg["kernel_size_set"]
    keys = iter(jax.random.split(key, 128))
    nk = lambda: next(keys)

    def bn_affine(c):
        gamma = 1.0 + 0.1 * jax.random.normal(nk(), (1, c))
        beta = 0.1 * jax.random.normal(nk(), (1, c))
        mean = 0.1 * jax.random.normal(nk(), (1, c))
        var = jnp.abs(1.0 + 0.1 * jax.random.normal(nk(), (1, c)))
        scale = gamma / jnp.sqrt(var + 1e-5)
        shift = beta - mean * scale
        return scale.astype(jnp.float32), shift.astype(jnp.float32)

    params = {}
    e_scale, e_shift = bn_affine(C)
    params["expand"] = dict(
        wt=(0.3 * jax.random.normal(nk(), (Fin, C))).astype(jnp.float32),
        b=(0.1 * jax.random.normal(nk(), (1, C))).astype(jnp.float32),
        scale=e_scale, shift=e_shift)

    layers = []
    for _stage in range(cfg["stage_number"]):
        row = []
        for k in ks:
            scale, shift = bn_affine(C)
            row.append(dict(
                w=(0.2 * jax.random.normal(nk(), (k, C, C))).astype(jnp.float32),
                b=(0.1 * jax.random.normal(nk(), (1, C))).astype(jnp.float32),
                scale=scale, shift=shift))
        layers.append(row)
    params["layers"] = layers

    params["shrink"] = dict(
        wt=(0.2 * jax.random.normal(nk(), (C, Fout))).astype(jnp.float32),
        b=(0.1 * jax.random.normal(nk(), (1, Fout))).astype(jnp.float32))
    return params


def prepare_kernel_params(params, cfg, T):
    """Offline folding + packing for the kernel:
       * BN scale folded into conv weights; conv bias folded into BN shift.
       * All tap weights in ONE (n_stages*sum(ks), C, C) stack.
       * Per-stage shifts pre-broadcast into ONE (n_stages, nb*T, C) stack.
       * Tap shifts / stride / adaptive pool / branch sum as two constants.
       * Shrink weight & bias zero-padded to lane width W = max(C, Fout)."""
    ks, ss = tuple(cfg["kernel_size_set"]), tuple(cfg["stride_set"])
    C, Fout = cfg["channel"], cfg["out_features"]
    n_stages = cfg["stage_number"]
    W = max(C, Fout)

    ep, sp = params["expand"], params["shrink"]
    expand_wt = (ep["wt"] * ep["scale"]).astype(jnp.float32)
    bias2 = jnp.concatenate([
        jnp.pad(ep["b"] * ep["scale"] + ep["shift"], ((0, 0), (0, W - C))),
        jnp.pad(sp["b"], ((0, 0), (0, W - Fout)))], axis=0).astype(jnp.float32)

    w_blocks, shift_stages = [], []
    for stage in range(n_stages):
        sh_blocks = []
        for ci in range(len(ks)):
            lp = params["layers"][stage][ci]
            w_blocks.append((lp["w"] * lp["scale"]).astype(jnp.float32))
            sh = lp["b"] * lp["scale"] + lp["shift"]               # (1, C)
            sh_blocks.append(jnp.broadcast_to(sh, (T, C)))
        shift_stages.append(jnp.concatenate(sh_blocks, axis=0))    # (nb*T, C)
    w_stack = jnp.concatenate(w_blocks, axis=0)                    # (n_stages*sum(ks), C, C)
    shift_full = jnp.stack(shift_stages).astype(jnp.float32)       # (n_stages, nb*T, C)

    shrink_wt = jnp.pad(sp["wt"], ((0, 0), (0, W - Fout))).astype(jnp.float32)

    return dict(expand_wt=expand_wt, w_stack=w_stack, bias2=bias2,
                shift_full=shift_full, sc_all=_tap_fold_matrix(T, ks),
                pt_wide=_pool_branchcat_matrix(T, ks, ss), shrink_wt=shrink_wt)


# -----------------------------------------------------------------------------
# Pure-JAX reference (uses the RAW params: bias + BN affine applied separately)
# -----------------------------------------------------------------------------
def ref_forward(x, params, cfg):
    B, T, Fin = x.shape
    C = cfg["channel"]
    hp = jax.lax.Precision.HIGHEST

    p = params["expand"]
    h = jnp.dot(x.reshape(B * T, Fin), p["wt"], precision=hp) + p["b"]
    h = h * p["scale"] + p["shift"]
    h = jnp.where(h >= 0, h, 0.01 * h).reshape(B, T, C)

    for stage in range(cfg["stage_number"]):
        out = jnp.zeros_like(h)
        for ci, (k, s) in enumerate(zip(cfg["kernel_size_set"], cfg["stride_set"])):
            lp = params["layers"][stage][ci]
            Lc = (T - k) // s + 1
            z = jnp.zeros((B, Lc, C), jnp.float32) + lp["b"]
            for tap in range(k):
                xs = h[:, tap: tap + (Lc - 1) * s + 1: s, :]
                z = z + jnp.einsum("blc,cd->bld", xs, lp["w"][tap], precision=hp)
            z = z * lp["scale"] + lp["shift"]
            z = jnp.where(z >= 0, z, 0.01 * z)
            pooled = []
            for i in range(T):
                st = (i * Lc) // T
                en = -((-(i + 1) * Lc) // T)
                pooled.append(jnp.mean(z[:, st:en, :], axis=1))
            out = out + jnp.stack(pooled, axis=1)
        h = out

    y = (jnp.dot(h.reshape(B * T, C), params["shrink"]["wt"], precision=hp)
         + params["shrink"]["b"])
    return y.reshape(B, T, cfg["out_features"])


# -----------------------------------------------------------------------------
# Main
# -----------------------------------------------------------------------------
if __name__ == "__main__":
    cfg = dict(
        in_features=6,
        out_features=12,
        kernel_size_set=(3, 5),
        stride_set=(1, 2),
        channel=32,
        stage_number=2,
        seq_len=16,
    )
    B, T = 2, cfg["seq_len"]

    key = jax.random.PRNGKey(0)
    k_x, k_p = jax.random.split(key)
    x = jax.random.normal(k_x, (B, T, cfg["in_features"]), dtype=jnp.float32)
    params = init_params(k_p, cfg)
    kparams = prepare_kernel_params(params, cfg, T)

    fwd = jax.jit(lambda xx: pooling_net_forward(xx, kparams, cfg))
    out = fwd(x)
    y = jax.block_until_ready(out["fullpose_6d"])
    assert y.shape == (B, T, cfg["out_features"])

    y_ref = jax.block_until_ready(ref_forward(x, params, cfg))
    np.testing.assert_allclose(np.asarray(y), np.asarray(y_ref), rtol=1e-2, atol=1e-2)

    print("KERNEL_OK")
</pallas_src>

<mosaic_0001>
module attributes {stable_mosaic.version = 11 : i64} {
  func.func @_fused_forward_kernel(%arg0: i32, %arg1: memref<1x16x6xf32, #tpu.memory_space<vmem>>, %arg2: memref<6x32xf32, #tpu.memory_space<vmem>>, %arg3: memref<16x32x32xf32, #tpu.memory_space<vmem>>, %arg4: memref<2x32xf32, #tpu.memory_space<vmem>>, %arg5: memref<2x32x32xf32, #tpu.memory_space<vmem>>, %arg6: memref<32x128xf32, #tpu.memory_space<vmem>>, %arg7: memref<16x32xf32, #tpu.memory_space<vmem>>, %arg8: memref<32x32xf32, #tpu.memory_space<vmem>>, %arg9: memref<1x16x32xf32, #tpu.memory_space<vmem>>) attributes {dimension_semantics = [#tpu.dimension_semantics<parallel>], iteration_bounds = array<i64: 2>, scalar_prefetch = 0 : i64, scratch_operands = 0 : i64, tpu.core_type = #tpu.core_type<tc>, window_params = [{transform_indices = @transform_0, window_bounds = array<i64: 1, 16, 6>}, {pipeline_mode = #tpu.pipeline_mode<synchronous>, transform_indices = @transform_1, window_bounds = array<i64: 6, 32>}, {pipeline_mode = #tpu.pipeline_mode<synchronous>, transform_indices = @transform_2, window_bounds = array<i64: 16, 32, 32>}, {pipeline_mode = #tpu.pipeline_mode<synchronous>, transform_indices = @transform_3, window_bounds = array<i64: 2, 32>}, {pipeline_mode = #tpu.pipeline_mode<synchronous>, transform_indices = @transform_4, window_bounds = array<i64: 2, 32, 32>}, {pipeline_mode = #tpu.pipeline_mode<synchronous>, transform_indices = @transform_5, window_bounds = array<i64: 32, 128>}, {pipeline_mode = #tpu.pipeline_mode<synchronous>, transform_indices = @transform_6, window_bounds = array<i64: 16, 32>}, {pipeline_mode = #tpu.pipeline_mode<synchronous>, transform_indices = @transform_7, window_bounds = array<i64: 32, 32>}, {transform_indices = @transform_8, window_bounds = array<i64: 1, 16, 32>}]} {
    %c0 = arith.constant 0 : index
    %c0_0 = arith.constant 0 : index
    %c0_1 = arith.constant 0 : index
    %0 = vector.load %arg1[%c0, %c0_0, %c0_1] : memref<1x16x6xf32, #tpu.memory_space<vmem>>, vector<1x16x6xf32>
    %1 = vector.shape_cast %0 : vector<1x16x6xf32> to vector<16x6xf32>
    %c0_2 = arith.constant 0 : index
    %c0_3 = arith.constant 0 : index
    %2 = vector.load %arg2[%c0_2, %c0_3] : memref<6x32xf32, #tpu.memory_space<vmem>>, vector<6x32xf32>
    %cst = arith.constant dense<0.000000e+00> : vector<16x32xf32>
    %3 = tpu.matmul %1, %2, %cst {dimension_numbers = #tpu.dot_dimension_numbers<[1], [0], [0], [1], [0, 0, 1, 1], [], []>} : vector<16x6xf32>, vector<6x32xf32>, vector<16x32xf32> -> vector<16x32xf32>
    %c0_4 = arith.constant 0 : index
    %c0_5 = arith.constant 0 : index
    %4 = vector.load %arg4[%c0_4, %c0_5] : memref<2x32xf32, #tpu.memory_space<vmem>>, vector<1x32xf32>
    %5 = vector.broadcast %4 : vector<1x32xf32> to vector<16x32xf32>
    %6 = arith.addf %3, %5 : vector<16x32xf32>
    %cst_6 = arith.constant 0.00999999977 : f32
    %7 = vector.broadcast %cst_6 : f32 to vector<16x32xf32>
    %8 = arith.mulf %7, %6 : vector<16x32xf32>
    %9 = arith.maximumf %6, %8 : vector<16x32xf32>
    %c0_7 = arith.constant 0 : index
    %c0_8 = arith.constant 0 : index
    %c0_9 = arith.constant 0 : index
    %10 = vector.load %arg3[%c0_7, %c0_8, %c0_9] : memref<16x32x32xf32, #tpu.memory_space<vmem>>, vector<1x32x32xf32>
    %11 = vector.shape_cast %10 : vector<1x32x32xf32> to vector<32x32xf32>
    %cst_10 = arith.constant dense<0.000000e+00> : vector<16x32xf32>
    %12 = tpu.matmul %9, %11, %cst_10 {dimension_numbers = #tpu.dot_dimension_numbers<[1], [0], [0], [1], [0, 0, 1, 1], [], []>} : vector<16x32xf32>, vector<32x32xf32>, vector<16x32xf32> -> vector<16x32xf32>
    %c1 = arith.constant 1 : index
    %c0_11 = arith.constant 0 : index
    %c0_12 = arith.constant 0 : index
    %13 = vector.load %arg3[%c1, %c0_11, %c0_12] : memref<16x32x32xf32, #tpu.memory_space<vmem>>, vector<1x32x32xf32>
    %14 = vector.shape_cast %13 : vector<1x32x32xf32> to vector<32x32xf32>
    %cst_13 = arith.constant dense<0.000000e+00> : vector<16x32xf32>
    %15 = tpu.matmul %9, %14, %cst_13 {dimension_numbers = #tpu.dot_dimension_numbers<[1], [0], [0], [1], [0, 0, 1, 1], [], []>} : vector<16x32xf32>, vector<32x32xf32>, vector<16x32xf32> -> vector<16x32xf32>
    %c2 = arith.constant 2 : index
    %c0_14 = arith.constant 0 : index
    %c0_15 = arith.constant 0 : index
    %16 = vector.load %arg3[%c2, %c0_14, %c0_15] : memref<16x32x32xf32, #tpu.memory_space<vmem>>, vector<1x32x32xf32>
    %17 = vector.shape_cast %16 : vector<1x32x32xf32> to vector<32x32xf32>
    %cst_16 = arith.constant dense<0.000000e+00> : vector<16x32xf32>
    %18 = tpu.matmul %9, %17, %cst_16 {dimension_numbers = #tpu.dot_dimension_numbers<[1], [0], [0], [1], [0, 0, 1, 1], [], []>} : vector<16x32xf32>, vector<32x32xf32>, vector<16x32xf32> -> vector<16x32xf32>
    %c3 = arith.constant 3 : index
    %c0_17 = arith.constant 0 : index
    %c0_18 = arith.constant 0 : index
    %19 = vector.load %arg3[%c3, %c0_17, %c0_18] : memref<16x32x32xf32, #tpu.memory_space<vmem>>, vector<1x32x32xf32>
    %20 = vector.shape_cast %19 : vector<1x32x32xf32> to vector<32x32xf32>
    %cst_19 = arith.constant dense<0.000000e+00> : vector<16x32xf32>
    %21 = tpu.matmul %9, %20, %cst_19 {dimension_numbers = #tpu.dot_dimension_numbers<[1], [0], [0], [1], [0, 0, 1, 1], [], []>} : vector<16x32xf32>, vector<32x32xf32>, vector<16x32xf32> -> vector<16x32xf32>
    %c4 = arith.constant 4 : index
    %c0_20 = arith.constant 0 : index
    %c0_21 = arith.constant 0 : index
    %22 = vector.load %arg3[%c4, %c0_20, %c0_21] : memref<16x32x32xf32, #tpu.memory_space<vmem>>, vector<1x32x32xf32>
    %23 = vector.shape_cast %22 : vector<1x32x32xf32> to vector<32x32xf32>
    %cst_22 = arith.constant dense<0.000000e+00> : vector<16x32xf32>
    %24 = tpu.matmul %9, %23, %cst_22 {dimension_numbers = #tpu.dot_dimension_numbers<[1], [0], [0], [1], [0, 0, 1, 1], [], []>} : vector<16x32xf32>, vector<32x32xf32>, vector<16x32xf32> -> vector<16x32xf32>
    %c5 = arith.constant 5 : index
    %c0_23 = arith.constant 0 : index
    %c0_24 = arith.constant 0 : index
    %25 = vector.load %arg3[%c5, %c0_23, %c0_24] : memref<16x32x32xf32, #tpu.memory_space<vmem>>, vector<1x32x32xf32>
    %26 = vector.shape_cast %25 : vector<1x32x32xf32> to vector<32x32xf32>
    %cst_25 = arith.constant dense<0.000000e+00> : vector<16x32xf32>
    %27 = tpu.matmul %9, %26, %cst_25 {dimension_numbers = #tpu.dot_dimension_numbers<[1], [0], [0], [1], [0, 0, 1, 1], [], []>} : vector<16x32xf32>, vector<32x32xf32>, vector<16x32xf32> -> vector<16x32xf32>
    %c6 = arith.constant 6 : index
    %c0_26 = arith.constant 0 : index
    %c0_27 = arith.constant 0 : index
    %28 = vector.load %arg3[%c6, %c0_26, %c0_27] : memref<16x32x32xf32, #tpu.memory_space<vmem>>, vector<1x32x32xf32>
    %29 = vector.shape_cast %28 : vector<1x32x32xf32> to vector<32x32xf32>
    %cst_28 = arith.constant dense<0.000000e+00> : vector<16x32xf32>
    %30 = tpu.matmul %9, %29, %cst_28 {dimension_numbers = #tpu.dot_dimension_numbers<[1], [0], [0], [1], [0, 0, 1, 1], [], []>} : vector<16x32xf32>, vector<32x32xf32>, vector<16x32xf32> -> vector<16x32xf32>
    %c7 = arith.constant 7 : index
    %c0_29 = arith.constant 0 : index
    %c0_30 = arith.constant 0 : index
    %31 = vector.load %arg3[%c7, %c0_29, %c0_30] : memref<16x32x32xf32, #tpu.memory_space<vmem>>, vector<1x32x32xf32>
    %32 = vector.shape_cast %31 : vector<1x32x32xf32> to vector<32x32xf32>
    %cst_31 = arith.constant dense<0.000000e+00> : vector<16x32xf32>
    %33 = tpu.matmul %9, %32, %cst_31 {dimension_numbers = #tpu.dot_dimension_numbers<[1], [0], [0], [1], [0, 0, 1, 1], [], []>} : vector<16x32xf32>, vector<32x32xf32>, vector<16x32xf32> -> vector<16x32xf32>
    %34 = tpu.concatenate %12, %15, %18, %21, %24, %27, %30, %33 in 0 : vector<16x32xf32>, vector<16x32xf32>, vector<16x32xf32>, vector<16x32xf32>, vector<16x32xf32>, vector<16x32xf32>, vector<16x32xf32>, vector<16x32xf32> -> vector<128x32xf32>
    %c0_32 = arith.constant 0 : index
    %c0_33 = arith.constant 0 : index
    %35 = vector.load %arg6[%c0_32, %c0_33] : memref<32x128xf32, #tpu.memory_space<vmem>>, vector<32x128xf32>
    %cst_34 = arith.constant dense<0.000000e+00> : vector<32x32xf32>
    %36 = tpu.matmul %35, %34, %cst_34 {dimension_numbers = #tpu.dot_dimension_numbers<[1], [0], [0], [1], [0, 0, 1, 1], [], []>} : vector<32x128xf32>, vector<128x32xf32>, vector<32x32xf32> -> vector<32x32xf32>
    %c0_35 = arith.constant 0 : index
    %c0_36 = arith.constant 0 : index
    %c0_37 = arith.constant 0 : index
    %37 = vector.load %arg5[%c0_35, %c0_36, %c0_37] : memref<2x32x32xf32, #tpu.memory_space<vmem>>, vector<1x32x32xf32>
    %38 = vector.shape_cast %37 : vector<1x32x32xf32> to vector<32x32xf32>
    %39 = arith.addf %36, %38 : vector<32x32xf32>
    %cst_38 = arith.constant 0.00999999977 : f32
    %40 = vector.broadcast %cst_38 : f32 to vector<32x32xf32>
    %41 = arith.mulf %40, %39 : vector<32x32xf32>
    %42 = arith.maximumf %39, %41 : vector<32x32xf32>
    %c0_39 = arith.constant 0 : index
    %c0_40 = arith.constant 0 : index
    %43 = vector.load %arg7[%c0_39, %c0_40] : memref<16x32xf32, #tpu.memory_space<vmem>>, vector<16x32xf32>
    %cst_41 = arith.constant dense<0.000000e+00> : vector<16x32xf32>
    %44 = tpu.matmul %43, %42, %cst_41 {dimension_numbers = #tpu.dot_dimension_numbers<[1], [0], [0], [1], [0, 0, 1, 1], [], []>} : vector<16x32xf32>, vector<32x32xf32>, vector<16x32xf32> -> vector<16x32xf32>
    %c8 = arith.constant 8 : index
    %c0_42 = arith.constant 0 : index
    %c0_43 = arith.constant 0 : index
    %45 = vector.load %arg3[%c8, %c0_42, %c0_43] : memref<16x32x32xf32, #tpu.memory_space<vmem>>, vector<1x32x32xf32>
    %46 = vector.shape_cast %45 : vector<1x32x32xf32> to vector<32x32xf32>
    %cst_44 = arith.constant dense<0.000000e+00> : vector<16x32xf32>
    %47 = tpu.matmul %44, %46, %cst_44 {dimension_numbers = #tpu.dot_dimension_numbers<[1], [0], [0], [1], [0, 0, 1, 1], [], []>} : vector<16x32xf32>, vector<32x32xf32>, vector<16x32xf32> -> vector<16x32xf32>
    %c9 = arith.constant 9 : index
    %c0_45 = arith.constant 0 : index
    %c0_46 = arith.constant 0 : index
    %48 = vector.load %arg3[%c9, %c0_45, %c0_46] : memref<16x32x32xf32, #tpu.memory_space<vmem>>, vector<1x32x32xf32>
    %49 = vector.shape_cast %48 : vector<1x32x32xf32> to vector<32x32xf32>
    %cst_47 = arith.constant dense<0.000000e+00> : vector<16x32xf32>
    %50 = tpu.matmul %44, %49, %cst_47 {dimension_numbers = #tpu.dot_dimension_numbers<[1], [0], [0], [1], [0, 0, 1, 1], [], []>} : vector<16x32xf32>, vector<32x32xf32>, vector<16x32xf32> -> vector<16x32xf32>
    %c10 = arith.constant 10 : index
    %c0_48 = arith.constant 0 : index
    %c0_49 = arith.constant 0 : index
    %51 = vector.load %arg3[%c10, %c0_48, %c0_49] : memref<16x32x32xf32, #tpu.memory_space<vmem>>, vector<1x32x32xf32>
    %52 = vector.shape_cast %51 : vector<1x32x32xf32> to vector<32x32xf32>
    %cst_50 = arith.constant dense<0.000000e+00> : vector<16x32xf32>
    %53 = tpu.matmul %44, %52, %cst_50 {dimension_numbers = #tpu.dot_dimension_numbers<[1], [0], [0], [1], [0, 0, 1, 1], [], []>} : vector<16x32xf32>, vector<32x32xf32>, vector<16x32xf32> -> vector<16x32xf32>
    %c11 = arith.constant 11 : index
    %c0_51 = arith.constant 0 : index
    %c0_52 = arith.constant 0 : index
    %54 = vector.load %arg3[%c11, %c0_51, %c0_52] : memref<16x32x32xf32, #tpu.memory_space<vmem>>, vector<1x32x32xf32>
    %55 = vector.shape_cast %54 : vector<1x32x32xf32> to vector<32x32xf32>
    %cst_53 = arith.constant dense<0.000000e+00> : vector<16x32xf32>
    %56 = tpu.matmul %44, %55, %cst_53 {dimension_numbers = #tpu.dot_dimension_numbers<[1], [0], [0], [1], [0, 0, 1, 1], [], []>} : vector<16x32xf32>, vector<32x32xf32>, vector<16x32xf32> -> vector<16x32xf32>
    %c12 = arith.constant 12 : index
    %c0_54 = arith.constant 0 : index
    %c0_55 = arith.constant 0 : index
    %57 = vector.load %arg3[%c12, %c0_54, %c0_55] : memref<16x32x32xf32, #tpu.memory_space<vmem>>, vector<1x32x32xf32>
    %58 = vector.shape_cast %57 : vector<1x32x32xf32> to vector<32x32xf32>
    %cst_56 = arith.constant dense<0.000000e+00> : vector<16x32xf32>
    %59 = tpu.matmul %44, %58, %cst_56 {dimension_numbers = #tpu.dot_dimension_numbers<[1], [0], [0], [1], [0, 0, 1, 1], [], []>} : vector<16x32xf32>, vector<32x32xf32>, vector<16x32xf32> -> vector<16x32xf32>
    %c13 = arith.constant 13 : index
    %c0_57 = arith.constant 0 : index
    %c0_58 = arith.constant 0 : index
    %60 = vector.load %arg3[%c13, %c0_57, %c0_58] : memref<16x32x32xf32, #tpu.memory_space<vmem>>, vector<1x32x32xf32>
    %61 = vector.shape_cast %60 : vector<1x32x32xf32> to vector<32x32xf32>
    %cst_59 = arith.constant dense<0.000000e+00> : vector<16x32xf32>
    %62 = tpu.matmul %44, %61, %cst_59 {dimension_numbers = #tpu.dot_dimension_numbers<[1], [0], [0], [1], [0, 0, 1, 1], [], []>} : vector<16x32xf32>, vector<32x32xf32>, vector<16x32xf32> -> vector<16x32xf32>
    %c14 = arith.constant 14 : index
    %c0_60 = arith.constant 0 : index
    %c0_61 = arith.constant 0 : index
    %63 = vector.load %arg3[%c14, %c0_60, %c0_61] : memref<16x32x32xf32, #tpu.memory_space<vmem>>, vector<1x32x32xf32>
    %64 = vector.shape_cast %63 : vector<1x32x32xf32> to vector<32x32xf32>
    %cst_62 = arith.constant dense<0.000000e+00> : vector<16x32xf32>
    %65 = tpu.matmul %44, %64, %cst_62 {dimension_numbers = #tpu.dot_dimension_numbers<[1], [0], [0], [1], [0, 0, 1, 1], [], []>} : vector<16x32xf32>, vector<32x32xf32>, vector<16x32xf32> -> vector<16x32xf32>
    %c15 = arith.constant 15 : index
    %c0_63 = arith.constant 0 : index
    %c0_64 = arith.constant 0 : index
    %66 = vector.load %arg3[%c15, %c0_63, %c0_64] : memref<16x32x32xf32, #tpu.memory_space<vmem>>, vector<1x32x32xf32>
    %67 = vector.shape_cast %66 : vector<1x32x32xf32> to vector<32x32xf32>
    %cst_65 = arith.constant dense<0.000000e+00> : vector<16x32xf32>
    %68 = tpu.matmul %44, %67, %cst_65 {dimension_numbers = #tpu.dot_dimension_numbers<[1], [0], [0], [1], [0, 0, 1, 1], [], []>} : vector<16x32xf32>, vector<32x32xf32>, vector<16x32xf32> -> vector<16x32xf32>
    %69 = tpu.concatenate %47, %50, %53, %56, %59, %62, %65, %68 in 0 : vector<16x32xf32>, vector<16x32xf32>, vector<16x32xf32>, vector<16x32xf32>, vector<16x32xf32>, vector<16x32xf32>, vector<16x32xf32>, vector<16x32xf32> -> vector<128x32xf32>
    %c0_66 = arith.constant 0 : index
    %c0_67 = arith.constant 0 : index
    %70 = vector.load %arg6[%c0_66, %c0_67] : memref<32x128xf32, #tpu.memory_space<vmem>>, vector<32x128xf32>
    %cst_68 = arith.constant dense<0.000000e+00> : vector<32x32xf32>
    %71 = tpu.matmul %70, %69, %cst_68 {dimension_numbers = #tpu.dot_dimension_numbers<[1], [0], [0], [1], [0, 0, 1, 1], [], []>} : vector<32x128xf32>, vector<128x32xf32>, vector<32x32xf32> -> vector<32x32xf32>
    %c1_69 = arith.constant 1 : index
    %c0_70 = arith.constant 0 : index
    %c0_71 = arith.constant 0 : index
    %72 = vector.load %arg5[%c1_69, %c0_70, %c0_71] : memref<2x32x32xf32, #tpu.memory_space<vmem>>, vector<1x32x32xf32>
    %73 = vector.shape_cast %72 : vector<1x32x32xf32> to vector<32x32xf32>
    %74 = arith.addf %71, %73 : vector<32x32xf32>
    %cst_72 = arith.constant 0.00999999977 : f32
    %75 = vector.broadcast %cst_72 : f32 to vector<32x32xf32>
    %76 = arith.mulf %75, %74 : vector<32x32xf32>
    %77 = arith.maximumf %74, %76 : vector<32x32xf32>
    %c0_73 = arith.constant 0 : index
    %c0_74 = arith.constant 0 : index
    %78 = vector.load %arg7[%c0_73, %c0_74] : memref<16x32xf32, #tpu.memory_space<vmem>>, vector<16x32xf32>
    %cst_75 = arith.constant dense<0.000000e+00> : vector<16x32xf32>
    %79 = tpu.matmul %78, %77, %cst_75 {dimension_numbers = #tpu.dot_dimension_numbers<[1], [0], [0], [1], [0, 0, 1, 1], [], []>} : vector<16x32xf32>, vector<32x32xf32>, vector<16x32xf32> -> vector<16x32xf32>
    %c0_76 = arith.constant 0 : index
    %c0_77 = arith.constant 0 : index
    %80 = vector.load %arg8[%c0_76, %c0_77] : memref<32x32xf32, #tpu.memory_space<vmem>>, vector<32x32xf32>
    %cst_78 = arith.constant dense<0.000000e+00> : vector<16x32xf32>
    %81 = tpu.matmul %79, %80, %cst_78 {dimension_numbers = #tpu.dot_dimension_numbers<[1], [0], [0], [1], [0, 0, 1, 1], [], []>} : vector<16x32xf32>, vector<32x32xf32>, vector<16x32xf32> -> vector<16x32xf32>
    %c1_79 = arith.constant 1 : index
    %c0_80 = arith.constant 0 : index
    %82 = vector.load %arg4[%c1_79, %c0_80] : memref<2x32xf32, #tpu.memory_space<vmem>>, vector<1x32xf32>
    %83 = vector.broadcast %82 : vector<1x32xf32> to vector<16x32xf32>
    %84 = arith.addf %81, %83 : vector<16x32xf32>
    %c0_81 = arith.constant 0 : index
    %c0_82 = arith.constant 0 : index
    %c0_83 = arith.constant 0 : index
    %85 = vector.load %arg9[%c0_81, %c0_82, %c0_83] : memref<1x16x32xf32, #tpu.memory_space<vmem>>, vector<1x16x32xf32>
    %86 = vector.shape_cast %85 : vector<1x16x32xf32> to vector<16x32xf32>
    %87 = vector.shape_cast %84 : vector<16x32xf32> to vector<1x16x32xf32>
    tpu.vector_store %arg9[%c0_81, %c0_82, %c0_83], %87 {strides = array<i32>} : memref<1x16x32xf32, #tpu.memory_space<vmem>>, vector<1x16x32xf32>,
    return
  }
  func.func @transform_0(%arg0: i32) -> (i32, i32, i32) {
    %c0_i32 = arith.constant 0 : i32
    %c0_i32_0 = arith.constant 0 : i32
    %c0_i32_1 = arith.constant 0 : i32
    return %arg0, %c0_i32, %c0_i32_0 : i32, i32, i32
  }
  func.func @transform_1(%arg0: i32) -> (i32, i32) {
    %c0_i32 = arith.constant 0 : i32
    %c0_i32_0 = arith.constant 0 : i32
    %c0_i32_1 = arith.constant 0 : i32
    return %c0_i32, %c0_i32_0 : i32, i32
  }
  func.func @transform_2(%arg0: i32) -> (i32, i32, i32) {
    %c0_i32 = arith.constant 0 : i32
    %c0_i32_0 = arith.constant 0 : i32
    %c0_i32_1 = arith.constant 0 : i32
    %c0_i32_2 = arith.constant 0 : i32
    return %c0_i32, %c0_i32_0, %c0_i32_1 : i32, i32, i32
  }
  func.func @transform_3(%arg0: i32) -> (i32, i32) {
    %c0_i32 = arith.constant 0 : i32
    %c0_i32_0 = arith.constant 0 : i32
    %c0_i32_1 = arith.constant 0 : i32
    return %c0_i32, %c0_i32_0 : i32, i32
  }
  func.func @transform_4(%arg0: i32) -> (i32, i32, i32) {
    %c0_i32 = arith.constant 0 : i32
    %c0_i32_0 = arith.constant 0 : i32
    %c0_i32_1 = arith.constant 0 : i32
    %c0_i32_2 = arith.constant 0 : i32
    return %c0_i32, %c0_i32_0, %c0_i32_1 : i32, i32, i32
  }
  func.func @transform_5(%arg0: i32) -> (i32, i32) {
    %c0_i32 = arith.constant 0 : i32
    %c0_i32_0 = arith.constant 0 : i32
    %c0_i32_1 = arith.constant 0 : i32
    return %c0_i32, %c0_i32_0 : i32, i32
  }
  func.func @transform_6(%arg0: i32) -> (i32, i32) {
    %c0_i32 = arith.constant 0 : i32
    %c0_i32_0 = arith.constant 0 : i32
    %c0_i32_1 = arith.constant 0 : i32
    return %c0_i32, %c0_i32_0 : i32, i32
  }
  func.func @transform_7(%arg0: i32) -> (i32, i32) {
    %c0_i32 = arith.constant 0 : i32
    %c0_i32_0 = arith.constant 0 : i32
    %c0_i32_1 = arith.constant 0 : i32
    return %c0_i32, %c0_i32_0 : i32, i32
  }
  func.func @transform_8(%arg0: i32) -> (i32, i32, i32) {
    %c0_i32 = arith.constant 0 : i32
    %c0_i32_0 = arith.constant 0 : i32
    %c0_i32_1 = arith.constant 0 : i32
    return %arg0, %c0_i32, %c0_i32_0 : i32, i32, i32
  }
}

</mosaic_0001>

<bundles_post_ra>
// kernel: _lambda_.1
= control target key start
LH: loop header
LB: loop body
LE: loop exit
PB: predicated region body
PF: predicated region fallthrough
CT: control target
= control target key end

     0   :  { %13 = vsyncpa [#allocation3], 0  ;;  %s3436_s0 = inlined_call_operand.vmem [shape: f32[2,16,6], index: 0, kind: input, shape index: {}]   ;;  %s3437_s1 = inlined_call_operand.vmem [shape: f32[6,32], index: 1, kind: input, shape index: {}]   ;;  %s3438_s2 = inlined_call_operand.hbm [shape: f32[16,32,32], index: 2, kind: input, shape index: {}]   ;;  %s3439_s3 = inlined_call_operand.vmem [shape: f32[2,32], index: 3, kind: input, shape index: {}]   ;;  %s3440_s4 = inlined_call_operand.hbm [shape: f32[2,32,32], index: 4, kind: input, shape index: {}]   ;;  %s3441_s5 = inlined_call_operand.hbm [shape: f32[32,128], index: 5, kind: input, shape index: {}]   ;;  %s3442_s6 = inlined_call_operand.vmem [shape: f32[16,32], index: 6, kind: input, shape index: {}]   ;;  %s3443_s7 = inlined_call_operand.vmem [shape: f32[32,32], index: 7, kind: input, shape index: {}]   ;;  %s3444_s8 = inlined_call_operand.vmem [shape: f32[2,16,32], index: 8, kind: output, shape index: {}]  }
   0x1   :  { %14 = vsyncpa [#allocation5], 0  ;;  %s3191_s27 = smov 0  }
   0x2 LB: > { %s3197_s28 = sadd.s32 4294967295, %s3139_s27   ;;  %p2277_p0 = scmp.ge.s32.totalorder %s3139_s27, 1  ;;  %s3139_s27 = sphi %s3191_s27, %s20_s27  }
   0x3   : > { %p224_p1 = scmp.lt.s32.totalorder %s3139_s27, 3  ;;  %p3445_p2 = scmp.eq.s32.totalorder %s3197_s28, 0 }
   0x4   : > { %s3141_s30 = smov [#allocation4]   ;;  %s3142_s10 = smov [#allocation2]  }
   0x5   : > { %p3202_p3 = pnand %p2277_p0, %p224_p1  ;;  %s255_s9 = sshll.u32 %s3141_s30, 4  ;;  %s256_s9 = int_to_ptr.vmem [resolvable:$true] %s255_s9 }
   0x6   : > { %s239_s11 = sshll.u32 %s3142_s10, 4  ;;  %s3143_s13 = smov [#allocation6]   ;;  %s3214_s11 = int_to_ptr.vmem [resolvable:$true] %s239_s11 }
   0x7   : > { %s3447_s29 = scalar_select %p3202_p3, 1, 0 }
   0x8   : > { %p3012_p4 = pneg %p3202_p3  ;;  %s268_s14 = sshll.u32 %s3143_s13, 4  ;;  %s3216_s14 = int_to_ptr.vmem [resolvable:$true] %s268_s14 }
   0x9   : > { %s3041_s17 = scalar_lea.hbm %s3440_s4, 1024 }
   0xa   : > { %p3210_p5 = pnand %p3445_p2, %p3012_p4  ;;  %p3042_p6 = scmp.ne.s32.totalorder %s3440_s4, %s3041_s17 }
   0xb   : > { %p3048_p10 = scmp.lt.u32.totalorder %s3041_s17, %s3440_s4 }
   0xc   : > { %p3226_p7 = pneg %p3210_p5 }
   0xe   : > { %p3044_p8 = pnand %p3226_p7, %p3042_p6 }
  0x10   : > { %p3045_p9 = pneg %p3044_p8 }
  0x12   : > { %p3050_p11 = pnand %p3048_p10, %p3045_p9 }
  0x14   : > { %3053 = shalt.err (!%p3050_p11)
}
  0x15   : > { %s3054_s23 = scalar_lea.vmem %s256_s9, 1024  ;;  %p3062_p1 = scmp.lt.s32.totalorder %s256_s9, %s256_s9 }
  0x16   : > { %p3055_p12 = scmp.ne.s32.totalorder %s256_s9, %s3054_s23  ;;  %p3063_p4 = scmp.lt.s32.totalorder %s3054_s23, %s3054_s23 }
  0x18   : > { %p3057_p13 = pnand %p3055_p12, %p3226_p7  ;;  %p3064_p2 = por %p3063_p4, %p3062_p1 }
  0x1a   : > { %p3058_p0 = pneg %p3057_p13 }
  0x1c   : > { %p3065_p3 = pnand %p3064_p2, %p3058_p0 }
  0x1e   : > { %3068 = shalt.err (!%p3065_p3)
}
  0x1f   : > { %s3144_s24 = smov 128   ;;  %s3145_s25 = smov 8  }
  0x20   : > { %3018 = dma.hbm_to_vmem [thread:$0]  (!%p3210_p5), %s3440_s4, 1024, %s256_s9, [#allocation5], %s3144_s24, %s3144_s24, %s3145_s25  }
  0x21   : > { %s3069_s15 = scalar_lea.hbm %s3438_s2, 8192 }
  0x22   : > { %p3070_p2 = scmp.ne.s32.totalorder %s3438_s2, %s3069_s15  ;;  %p3076_p8 = scmp.lt.u32.totalorder %s3069_s15, %s3438_s2 }
  0x24   : > { %p3072_p3 = pnand %p3070_p2, %p3226_p7 }
  0x26   : > { %p3073_p6 = pneg %p3072_p3 }
  0x28   : > { %p3078_p9 = pnand %p3076_p8, %p3073_p6 }
  0x2a   : > { %3081 = shalt.err (!%p3078_p9)
}
  0x2b   : > { %s3082_s9 = scalar_lea.vmem %s3214_s11, 8192  ;;  %p3090_p13 = scmp.lt.s32.totalorder %s3214_s11, %s3214_s11 }
  0x2c   : > { %p3083_p10 = scmp.ne.s32.totalorder %s3214_s11, %s3082_s9  ;;  %p3091_p0 = scmp.lt.s32.totalorder %s3082_s9, %s3082_s9 }
  0x2e   : > { %p3085_p11 = pnand %p3083_p10, %p3226_p7  ;;  %p3092_p1 = por %p3091_p0, %p3090_p13 }
  0x30   : > { %p3086_p12 = pneg %p3085_p11 }
  0x32   : > { %p3093_p4 = pnand %p3092_p1, %p3086_p12 }
  0x34   : > { %3096 = shalt.err (!%p3093_p4)
}
  0x35   : > { %3015 = dma.hbm_to_vmem [thread:$0]  (!%p3210_p5), %s3438_s2, 8192, %s3214_s11, [#allocation3], %s3144_s24, %s3144_s24, %s3145_s25  }
  0x36   : > { %s3097_s30 = scalar_lea.hbm %s3441_s5, 512 }
  0x37   : > { %p3098_p2 = scmp.ne.s32.totalorder %s3441_s5, %s3097_s30  ;;  %p3104_p8 = scmp.lt.u32.totalorder %s3097_s30, %s3441_s5 }
  0x39   : > { %p3100_p3 = pnand %p3098_p2, %p3226_p7 }
  0x3b   : > { %p3101_p6 = pneg %p3100_p3 }
  0x3d   : > { %p3106_p9 = pnand %p3104_p8, %p3101_p6 }
  0x3f   : > { %3109 = shalt.err (!%p3106_p9)
}
  0x40   : > { %s3110_s11 = scalar_lea.vmem %s3216_s14, 512  ;;  %p3118_p13 = scmp.lt.s32.totalorder %s3216_s14, %s3216_s14 }
  0x41   : > { %p3111_p10 = scmp.ne.s32.totalorder %s3216_s14, %s3110_s11  ;;  %p3119_p0 = scmp.lt.s32.totalorder %s3110_s11, %s3110_s11 }
  0x43   : > { %p3113_p11 = pnand %p3111_p10, %p3226_p7  ;;  %p3120_p1 = por %p3119_p0, %p3118_p13 }
  0x45   : > { %p3114_p12 = pneg %p3113_p11 }
  0x47   : > { %p3121_p4 = pnand %p3120_p1, %p3114_p12 }
  0x49   : > { %3124 = shalt.err (!%p3121_p4)
}
  0x4a   : > { %3021 = dma.hbm_to_vmem [thread:$0]  (!%p3210_p5), %s3441_s5, 512, %s3216_s14, [#allocation5], %s3144_s24, %s3144_s24, %s3145_s25  }
  0x4b   : > { %p3450_p2 = scmp.ne.s32.totalorder %s3447_s29, 0 }
  0x4c   : > { %p3451_p7 = scmp.eq.s32.totalorder (!%p3450_p2), %s3197_s28, 0 }
  0x4d   : > { %298 = sbr.rel (%p3450_p2) target bundleno = 1928 (0x788), region = 52 }
  0x54   : > { %3130 = dma.done.wait (%p3451_p7), [#allocation3], 8192   ;;  %p3452_p3 = pmov %p3451_p7 }
  0x56   : > { %3132 = vsyncadd (%p3452_p3), [#allocation3], 4294959104  ;;  %p3453_p6 = pmov %p3452_p3 }
  0x57   : > { %p3454_p8 = pmov %p3452_p3 }
  0x58   : > { %3134 = dma.done.wait (%p3453_p6), [#allocation5], 1536  }
  0x59   : > { %3136 = vsyncadd (%p3454_p8), [#allocation5], 4294965760  ;;  %p340_p9 = scmp.lt.s32.totalorder %s3197_s28, 1  ;;  %vm365_vm0 = vcmask 1045504   ;;  %vm358_vm1 = vcmask 48128   ;;  %v448_v3 = vld [vmem:[#allocation2] sm:$0xff] }
  0x5a   : > { %v352_v0 = vld [vmem:[%s3437_s1] sm:$0x3f]  ;;  %v449_v4 = vld [vmem:[#allocation2 + $0x8] sm:$0xff]  ;;  %v450_v9 = vld [vmem:[#allocation2 + $0x10] sm:$0xff]  ;;  %vm452_vm2 = vcmask 261120  }
  0x5b   : > { %s3456_s28 = smov (!%p340_p9, %s3197_s28), 1  ;;  %2494 = vmatprep.subr.msk.mxu0 %vm365_vm0, %v352_v0  ;;  %v695_v5 = vld [vmem:[#allocation2 + $0x60] sm:$0xff]  ;;  %v2784_v6 = vpack.c.bf16 %v449_v4, %v448_v3  ;;  %v696_v7 = vld [vmem:[#allocation2 + $0x68] sm:$0xff]  ;;  %v451_v10 = vld [vmem:[#allocation2 + $0x18] sm:$0xff] }
  0x5c   : > { %s2335_s29 = sshll.u32 %s3456_s28, 4  ;;  %2495 = vmatpush3.msk.msra.mxu0 %vm365_vm0, %v352_v0  ;;  %v2808_v8 = vpack.c.bf16 %v696_v7, %v695_v5  ;;  %v697_v11 = vld [vmem:[#allocation2 + $0x70] sm:$0xff]  ;;  %v2788_v12 = vpack.c.bf16 %v451_v10, %v450_v9  ;;  %v698_v13 = vld [vmem:[#allocation2 + $0x78] sm:$0xff]  ;;  %v535_v15 = vld [vmem:[#allocation2 + $0x20] sm:$0xff] }
  0x5d   : > { %s344_s20 = scalar_lea.vmem %s3436_s0, %s2335_s29  ;;  %2785 = vmatprep.subr.bf16.mxu1 %v2784_v6  ;;  %v2812_v14 = vpack.c.bf16 %v698_v13, %v697_v11  ;;  %v536_v16 = vld [vmem:[#allocation2 + $0x28] sm:$0xff]  ;;  %v855_v17 = vld [vmem:[#allocation2 + $0xa0] sm:$0xff]  ;;  %v537_v28 = vld [vmem:[#allocation2 + $0x30] sm:$0xff]  ;;  %s349_s25 = scalar_lea.vmem %s3444_s8, %s2335_s29 }
  0x5e   : > { %v350_v1 = vld [vmem:[%s344_s20] sm:$0xff]  ;;  %v351_v2 = vld [vmem:[%s344_s20 + $0x8] sm:$0xff]  ;;  %2809 = vmatprep.subr.bf16.mxu0 %v2808_v8  ;;  %2787 = vmatpush3.bf16.msra.mxu1 %v2784_v6  ;;  %v2792_v18 = vpack.c.bf16 %v536_v16, %v535_v15  ;;  %v538_v29 = vld [vmem:[#allocation2 + $0x38] sm:$0xff] }
  0x5f   : > { %2496 = vmatprep.mubr.msk.f32.mxu0 %vm358_vm1, %v350_v1  ;;  %2789 = vmatprep.subr.bf16.mxu1 %v2788_v12  ;;  %v856_v19 = vld [vmem:[#allocation2 + $0xa8] sm:$0xff]  ;;  %v2290_v21 = vld [vmem:[%s3439_s3] ss:$0 sm:$0xff]  ;;  %v857_v30 = vld [vmem:[#allocation2 + $0xb0] sm:$0xff]  ;;  %v2796_v35 = vpack.c.bf16 %v538_v29, %v537_v28 }
  0x60   : > { %2497 = vmatmul.mubr.msk.f32.vlgmr.msra.gmra.mrb[0].mxu0 %vm358_vm1, %v351_v2  ;;  %v2824_v20 = vpack.c.bf16 %v856_v19, %v855_v17  ;;  %v858_v31 = vld [vmem:[#allocation2 + $0xb8] sm:$0xff]  ;;  %v615_v34 = vld [vmem:[#allocation2 + $0x40] sm:$0xff]  ;;  %v616_v37 = vld [vmem:[#allocation2 + $0x48] sm:$0xff] }
  0x61   : > { %2811 = vmatpush3.bf16.msra.mxu0 %v2808_v8  ;;  %v2828_v36 = vpack.c.bf16 %v858_v31, %v857_v30  ;;  %v1015_v38 = vld [vmem:[#allocation2 + $0xe0] sm:$0xff]  ;;  %v1016_v39 = vld [vmem:[#allocation2 + $0xe8] sm:$0xff]  ;;  %v2800_v40 = vpack.c.bf16 %v616_v37, %v615_v34  ;;  %v617_v42 = vld [vmem:[#allocation2 + $0x50] sm:$0xff] }
  0x62   : > { %2813 = vmatprep.subr.bf16.mxu0 %v2812_v14  ;;  %2791 = vmatpush3.bf16.msra.mxu1 %v2788_v12  ;;  %v2840_v41 = vpack.c.bf16 %v1016_v39, %v1015_v38  ;;  %v618_v43 = vld [vmem:[#allocation2 + $0x58] sm:$0xff]  ;;  %v1017_v44 = vld [vmem:[#allocation2 + $0xf0] sm:$0xff]  ;;  %v775_v48 = vld [vmem:[#allocation2 + $0x80] sm:$0xff] }
  0x63   : > { %2793 = vmatprep.subr.bf16.mxu1 %v2792_v18  ;;  %v1018_v45 = vld [vmem:[#allocation2 + $0xf8] sm:$0xff]  ;;  %v2804_v46 = vpack.c.bf16 %v618_v43, %v617_v42  ;;  %v776_v49 = vld [vmem:[#allocation2 + $0x88] sm:$0xff]  ;;  %v777_v51 = vld [vmem:[#allocation2 + $0x90] sm:$0xff] }
  0x64   : > { %v2844_v47 = vpack.c.bf16 %v1018_v45, %v1017_v44  ;;  %v2816_v50 = vpack.c.bf16 %v776_v49, %v775_v48  ;;  %v778_v52 = vld [vmem:[#allocation2 + $0x98] sm:$0xff]  ;;  %v935_v54 = vld [vmem:[#allocation2 + $0xc0] sm:$0xff]  ;;  %v936_v55 = vld [vmem:[#allocation2 + $0xc8] sm:$0xff] }
  0x65   : > { %2815 = vmatpush3.bf16.msra.mxu0 %v2812_v14  ;;  %v2820_v53 = vpack.c.bf16 %v778_v52, %v777_v51  ;;  %v2832_v56 = vpack.c.bf16 %v936_v55, %v935_v54  ;;  %v937_v57 = vld [vmem:[#allocation2 + $0xd0] sm:$0xff]  ;;  %v938_v58 = vld [vmem:[#allocation2 + $0xd8] sm:$0xff]  ;;  %v3349_v60 = vld [vmem:[#allocation6] sm:$0xff] }
  0x66   : > { %2825 = vmatprep.subr.bf16.mxu0 %v2824_v20  ;;  %v2836_v59 = vpack.c.bf16 %v938_v58, %v937_v57  ;;  %v1527_v28 = vld [vmem:[#allocation2 + $0x170] sm:$0xff]  ;;  %v1528_v29 = vld [vmem:[#allocation2 + $0x178] sm:$0xff]  ;;  %v1099_v31 = vld [vmem:[#allocation4 + $0x8] sm:$0xff] }
  0x67   : > { %v2916_v30 = vpack.c.bf16 %v1528_v29, %v1527_v28  ;;  %v1101_v37 = vld [vmem:[#allocation4 + $0x18] sm:$0xff]  ;;  %v1100_v39 = vld [vmem:[#allocation4 + $0x10] sm:$0xff]  ;;  %v1279_v51 = vld [vmem:[#allocation2 + $0x100] sm:$0xff] }
  0x68   : > { %v1280_v52 = vld [vmem:[#allocation2 + $0x108] sm:$0xff]  ;;  %v1282_v57 = vld [vmem:[#allocation2 + $0x118] sm:$0xff] }
  0x69   : > { %v2888_v55 = vpack.c.bf16 %v1280_v52, %v1279_v51  ;;  %v3371_v58 = vld [vmem:[%s3442_s6 + $0x8] sm:$0xff] }
  0x6a   : > { %v1606_v28 = vld [vmem:[#allocation2 + $0x188] sm:$0xff] }
 0x133   : > { %v2498_v22 = vpop.f32.mrb[0].mxu0 }
 0x134   : > { %v441_v23 = vadd.f32 %v2498_v22, %v2290_v21  ;;  %v435_v24 = vpop.f32.mrb[1].mxu0  ;;  %v3354_v22 = vld [vmem:[#allocation6 + $0x10] sm:$0xff] }
 0x135   : > { %v436_v25 = vadd.f32 %v2290_v21, %v435_v24  ;;  %v3352_v21 = vld [vmem:[#allocation6 + $0x8] sm:$0xff]  ;;  %v3364_v24 = vld [vmem:[%s3442_s6] sm:$0xff] }
 0x136   : > { %v445_v26 = vmul.f32 0.01, %v441_v23 }
 0x137   : > { %v444_v27 = vmul.f32 0.01, %v436_v25 }
 0x138   : > { %v3323_v33 = vmax.f32 %v441_v23, %v445_v26  ;;  %v3358_v23 = vld [vmem:[#allocation6 + $0x18] sm:$0xff]  ;;  %v1526_v26 = vld [vmem:[#allocation2 + $0x168] sm:$0xff] }
 0x139   : > { %v446_v32 = vmax.f32 %v436_v25, %v444_v27  ;;  %v1525_v25 = vld [vmem:[#allocation2 + $0x160] sm:$0xff] }
 0x13a   : > { %v2912_v27 = vpack.c.bf16 %v1526_v26, %v1525_v25 }
 0x13b   : > { %2507 = vmatprep.mubr.msk.f32.mxu1 %vm452_vm2, %v446_v32  ;;  %2540 = vmatprep.mubr.msk.f32.mxu0 %vm452_vm2, %v446_v32 }
 0x13c   : > { %2508 = vmatmul.mubr.msk.f32.vlgmr.msra.gmra.mrb[0].mxu1 %vm452_vm2, %v3323_v33  ;;  %2541 = vmatmul.mubr.msk.f32.vlgmr.msra.gmra.mrb[2].mxu0 %vm452_vm2, %v3323_v33 }
 0x13d   : > { %2795 = vmatpush3.bf16.msra.mxu1 %v2792_v18  ;;  %2827 = vmatpush3.bf16.msra.mxu0 %v2824_v20 }
 0x13e   : > { %2518 = vmatprep.mubr.msk.f32.mxu1 %vm452_vm2, %v446_v32  ;;  %2562 = vmatprep.mubr.msk.f32.mxu0 %vm452_vm2, %v446_v32 }
 0x13f   : > { %2797 = vmatprep.subr.bf16.mxu1 %v2796_v35  ;;  %2829 = vmatprep.subr.bf16.mxu0 %v2828_v36 }
 0x141   : > { %2799 = vmatpush3.bf16.msra.mxu1 %v2796_v35  ;;  %2831 = vmatpush3.bf16.msra.mxu0 %v2828_v36 }
 0x142   : > { %2801 = vmatprep.subr.bf16.mxu1 %v2800_v40  ;;  %2841 = vmatprep.subr.bf16.mxu0 %v2840_v41 }
 0x144   : > { %2519 = vmatmul.mubr.msk.f32.vlgmr.msra.gmra.mrb[2].mxu1 %vm452_vm2, %v3323_v33  ;;  %2563 = vmatmul.mubr.msk.f32.vlgmr.msra.gmra.mrb[4].mxu0 %vm452_vm2, %v3323_v33 }
 0x145   : > { %2803 = vmatpush3.bf16.msra.mxu1 %v2800_v40  ;;  %2529 = vmatprep.mubr.msk.f32.mxu1 %vm452_vm2, %v446_v32 }
 0x146   : > { %2843 = vmatpush3.bf16.msra.mxu0 %v2840_v41  ;;  %2584 = vmatprep.mubr.msk.f32.mxu0 %vm452_vm2, %v446_v32 }
 0x147   : > { %2805 = vmatprep.subr.bf16.mxu1 %v2804_v46  ;;  %2845 = vmatprep.subr.bf16.mxu0 %v2844_v47 }
 0x149   : > { %2807 = vmatpush3.bf16.msra.mxu1 %v2804_v46 }
 0x14a   : > { %2847 = vmatpush3.bf16.msra.mxu0 %v2844_v47  ;;  %2817 = vmatprep.subr.bf16.mxu1 %v2816_v50 }
 0x14c   : > { %2530 = vmatmul.mubr.msk.f32.vlgmr.msra.gmra.mrb[4].mxu1 %vm452_vm2, %v3323_v33 }
 0x14d   : > { %2585 = vmatmul.mubr.msk.f32.vlgmr.msra.gmra.mrb[6].mxu0 %vm452_vm2, %v3323_v33  ;;  %2819 = vmatpush3.bf16.msra.mxu1 %v2816_v50 }
 0x14e   : > { %2551 = vmatprep.mubr.msk.f32.mxu1 %vm452_vm2, %v446_v32  ;;  %2821 = vmatprep.subr.bf16.mxu1 %v2820_v53 }
 0x14f   : > { %2633 = vmatprep.mubr.msk.f32.mxu0 %vm452_vm2, %v3364_v24 }
 0x151   : > { %2823 = vmatpush3.bf16.msra.mxu1 %v2820_v53 }
 0x152   : > { %2833 = vmatprep.subr.bf16.mxu1 %v2832_v56 }
 0x154   : > { %2552 = vmatmul.mubr.msk.f32.vlgmr.msra.gmra.mrb[6].mxu1 %vm452_vm2, %v3323_v33 }
 0x155   : > { %2835 = vmatpush3.bf16.msra.mxu1 %v2832_v56  ;;  %2573 = vmatprep.mubr.msk.f32.mxu1 %vm452_vm2, %v446_v32  ;;  %v1098_v32 = vld [vmem:[#allocation4] sm:$0xff]  ;;  %v1281_v56 = vld [vmem:[#allocation2 + $0x110] sm:$0xff] }
 0x156   : > { %2837 = vmatprep.subr.bf16.mxu1 %v2836_v59 }
 0x159   : > { %2839 = vmatpush3.bf16.msra.mxu1 %v2836_v59  ;;  %v2892_v59 = vpack.c.bf16 %v1282_v57, %v1281_v56 }
 0x15c   : > { %2574 = vmatmul.mubr.msk.f32.vlgmr.msra.gmra.mrb[8].mxu1 %vm452_vm2, %v3323_v33 }
 0x15d   : > { %2619 = vmatprep.mubr.f32.mxu1 %v3349_v60 }
 0x20f   : > { %v2509_v61 = vpop.f32.mrb[0].mxu1  ;;  %v2542_v62 = vpop.f32.mrb[2].mxu0 }
 0x210   : > { %v525_v63 = vpop.f32.mrb[1].mxu1  ;;  %v765_v0 = vpop.f32.mrb[3].mxu0 }
 0x211   : > { %v2848_v1 = vpack.c.bf16 %v2509_v61, %v525_v63  ;;  %v2860_v2 = vpack.c.bf16 %v2542_v62, %v765_v0  ;;  %v1365_v61 = vld [vmem:[#allocation2 + $0x120] sm:$0xff]  ;;  %v1366_v62 = vld [vmem:[#allocation2 + $0x128] sm:$0xff] }
 0x212   : > { %v1685_v63 = vld [vmem:[#allocation2 + $0x1a0] sm:$0xff]  ;;  %v2896_v0 = vpack.c.bf16 %v1366_v62, %v1365_v61 }
 0x213   : > { %2849 = vmatprep.subr.bf16.mxu1 %v2848_v1 }
 0x214   : > { %2851 = vmatpush3.bf16.msra.mxu1 %v2848_v1  ;;  %v1686_v1 = vld [vmem:[#allocation2 + $0x1a8] sm:$0xff] }
 0x217   : > { %v2520_v3 = vpop.f32.mrb[2].mxu1  ;;  %v2564_v4 = vpop.f32.mrb[4].mxu0 }
 0x218   : > { %v605_v5 = vpop.f32.mrb[3].mxu1  ;;  %v925_v6 = vpop.f32.mrb[5].mxu0 }
 0x219   : > { %v2852_v7 = vpack.c.bf16 %v2520_v3, %v605_v5  ;;  %v2868_v8 = vpack.c.bf16 %v2564_v4, %v925_v6  ;;  %v1367_v3 = vld [vmem:[#allocation2 + $0x130] sm:$0xff]  ;;  %v1368_v4 = vld [vmem:[#allocation2 + $0x138] sm:$0xff] }
 0x21a   : > { %v1687_v5 = vld [vmem:[#allocation2 + $0x1b0] sm:$0xff]  ;;  %v1688_v6 = vld [vmem:[#allocation2 + $0x1b8] sm:$0xff] }
 0x21b   : > { %2853 = vmatprep.subr.bf16.mxu1 %v2852_v7 }
 0x21c   : > { %2855 = vmatpush3.bf16.msra.mxu1 %v2852_v7 }
 0x21f   : > { %v2531_v9 = vpop.f32.mrb[4].mxu1 }
 0x220   : > { %v2586_v10 = vpop.f32.mrb[6].mxu0  ;;  %v685_v11 = vpop.f32.mrb[5].mxu1 }
 0x221   : > { %v2856_v12 = vpack.c.bf16 %v2531_v9, %v685_v11  ;;  %v1085_v13 = vpop.f32.mrb[7].mxu0  ;;  %v1445_v9 = vld [vmem:[#allocation2 + $0x140] sm:$0xff]  ;;  %v2932_v11 = vpack.c.bf16 %v1688_v6, %v1687_v5  ;;  %v1928_v5 = vld [vmem:[#allocation4 + $0x38] sm:$0xff] }
 0x222   : > { %v2876_v14 = vpack.c.bf16 %v2586_v10, %v1085_v13  ;;  %v2900_v10 = vpack.c.bf16 %v1368_v4, %v1367_v3  ;;  %v1845_v13 = vld [vmem:[#allocation2 + $0x1e0] sm:$0xff] }
 0x223   : > { %2857 = vmatprep.subr.bf16.mxu1 %v2856_v12 }
 0x224   : > { %2859 = vmatpush3.bf16.msra.mxu1 %v2856_v12  ;;  %v1446_v12 = vld [vmem:[#allocation2 + $0x148] sm:$0xff] }
 0x225   : > { %2861 = vmatprep.subr.bf16.mxu1 %v2860_v2 }
 0x227   : > { %v2553_v15 = vpop.f32.mrb[6].mxu1 }
 0x228   : > { %v845_v16 = vpop.f32.mrb[7].mxu1  ;;  %2863 = vmatpush3.bf16.msra.mxu1 %v2860_v2  ;;  %v2928_v2 = vpack.c.bf16 %v1686_v1, %v1685_v63  ;;  %v1926_v63 = vld [vmem:[#allocation4 + $0x28] sm:$0xff] }
 0x229   : > { %v2864_v17 = vpack.c.bf16 %v2553_v15, %v845_v16  ;;  %v2904_v15 = vpack.c.bf16 %v1446_v12, %v1445_v9 }
 0x22b   : > { %2865 = vmatprep.subr.bf16.mxu1 %v2864_v17 }
 0x22c   : > { %2867 = vmatpush3.bf16.msra.mxu1 %v2864_v17  ;;  %v1447_v17 = vld [vmem:[#allocation2 + $0x150] sm:$0xff] }
 0x22d   : > { %2869 = vmatprep.subr.bf16.mxu1 %v2868_v8 }
 0x22f   : > { %v2575_v18 = vpop.f32.mrb[8].mxu1 }
 0x230   : > { %v1005_v19 = vpop.f32.mrb[9].mxu1  ;;  %2871 = vmatpush3.bf16.msra.mxu1 %v2868_v8 }
 0x231   : > { %v2872_v20 = vpack.c.bf16 %v2575_v18, %v1005_v19  ;;  %v1448_v18 = vld [vmem:[#allocation2 + $0x158] sm:$0xff]  ;;  %v1847_v19 = vld [vmem:[#allocation2 + $0x1f0] sm:$0xff] }
 0x232   : > { %v2908_v25 = vpack.c.bf16 %v1448_v18, %v1447_v17  ;;  %v2098_v17 = vld [vmem:[%s3443_s7 + $0x8] sm:$0xff] }
 0x233   : > { %2873 = vmatprep.subr.bf16.mxu1 %v2872_v20 }
 0x234   : > { %2875 = vmatpush3.bf16.msra.mxu1 %v2872_v20  ;;  %v1848_v20 = vld [vmem:[#allocation2 + $0x1f8] sm:$0xff] }
 0x235   : > { %2877 = vmatprep.subr.bf16.mxu1 %v2876_v14  ;;  %v2948_v26 = vpack.c.bf16 %v1848_v20, %v1847_v19 }
 0x238   : > { %2879 = vmatpush3.bf16.msra.mxu1 %v2876_v14  ;;  %v1846_v14 = vld [vmem:[#allocation2 + $0x1e8] sm:$0xff] }
 0x239   : > { %2913 = vmatprep.subr.bf16.mxu1 %v2912_v27  ;;  %v2944_v16 = vpack.c.bf16 %v1846_v14, %v1845_v13 }
 0x23b   : > { %2620 = vmatmul.mubr.f32.vlgmr.msra.gmra.mrb[10].mxu1 %v3352_v21 }
 0x23c   : > { %2622 = vmatprep.mubr.f32.mxu1 %v3354_v22  ;;  %2915 = vmatpush3.bf16.msra.mxu1 %v2912_v27  ;;  %v1605_v27 = vld [vmem:[#allocation2 + $0x180] sm:$0xff] }
 0x23d   : > { %2917 = vmatprep.subr.bf16.mxu1 %v2916_v30  ;;  %v2920_v29 = vpack.c.bf16 %v1606_v28, %v1605_v27 }
 0x23f   : > { %2623 = vmatmul.mubr.f32.gmra.mrb[12].mxu1 %v3358_v23 }
 0x240   : > { %2919 = vmatpush3.bf16.msra.mxu1 %v2916_v30  ;;  %v1607_v30 = vld [vmem:[#allocation2 + $0x190] sm:$0xff] }
 0x241   : > { %2929 = vmatprep.subr.bf16.mxu1 %v2928_v2 }
 0x30e   : > { %v2621_v33 = vpop.f32.mrb[10].mxu1 }
 0x30f   : > { %v1174_v34 = vadd.f32 %v2621_v33, %v1099_v31  ;;  %v1168_v35 = vpop.f32.mrb[11].mxu1  ;;  %v1608_v31 = vld [vmem:[#allocation2 + $0x198] sm:$0xff]  ;;  %v1765_v33 = vld [vmem:[#allocation2 + $0x1c0] sm:$0xff] }
 0x310   : > { %v1169_v36 = vadd.f32 %v1168_v35, %v1098_v32  ;;  %v2924_v32 = vpack.c.bf16 %v1608_v31, %v1607_v30  ;;  %v2330_v30 = vld [vmem:[%s3439_s3 + $0x1] ss:$0 sm:$0xff] }
 0x311   : > { %v1188_v38 = vmul.f32 0.01, %v1174_v34 }
 0x312   : > { %v1187_v40 = vmul.f32 0.01, %v1169_v36  ;;  %v2624_v41 = vpop.f32.mrb[12].mxu1 }
 0x313   : > { %v1192_v42 = vmax.f32 %v1174_v34, %v1188_v38  ;;  %v1184_v43 = vadd.f32 %v2624_v41, %v1101_v37  ;;  %v1178_v44 = vpop.f32.mrb[13].mxu1  ;;  %v1766_v34 = vld [vmem:[#allocation2 + $0x1c8] sm:$0xff]  ;;  %v1768_v37 = vld [vmem:[#allocation2 + $0x1d8] sm:$0xff] }
 0x314   : > { %v1191_v45 = vmax.f32 %v1169_v36, %v1187_v40  ;;  %v1179_v46 = vadd.f32 %v1178_v44, %v1100_v39  ;;  %v2936_v35 = vpack.c.bf16 %v1766_v34, %v1765_v33  ;;  %v1767_v36 = vld [vmem:[#allocation2 + $0x1d0] sm:$0xff] }
 0x315   : > { %v1190_v47 = vmul.f32 0.01, %v1184_v43  ;;  %v2940_v38 = vpack.c.bf16 %v1768_v37, %v1767_v36 }
 0x316   : > { %v1189_v48 = vmul.f32 0.01, %v1179_v46  ;;  %v2880_v49 = vpack.c.bf16 %v1192_v42, %v1191_v45 }
 0x317   : > { %v1194_v50 = vmax.f32 %v1184_v43, %v1190_v47 }
 0x318   : > { %v1193_v53 = vmax.f32 %v1179_v46, %v1189_v48  ;;  %2881 = vmatprep.subr.bf16.mxu0 %v2880_v49 }
 0x319   : > { %2883 = vmatpush3.bf16.msra.mxu0 %v2880_v49 }
 0x31a   : > { %v2884_v54 = vpack.c.bf16 %v1194_v50, %v1193_v53 }
 0x31c   : > { %2885 = vmatprep.subr.bf16.mxu0 %v2884_v54 }
 0x31d   : > { %2887 = vmatpush3.bf16.msra.mxu0 %v2884_v54 }
 0x31e   : > { %2889 = vmatprep.subr.bf16.mxu0 %v2888_v55 }
 0x320   : > { %2634 = vmatmul.mubr.msk.f32.vlgmr.msra.gmra.mrb[8].mxu0 %vm452_vm2, %v3371_v58 }
 0x321   : > { %2891 = vmatpush3.bf16.msra.mxu0 %v2888_v55 }
 0x322   : > { %2893 = vmatprep.subr.bf16.mxu0 %v2892_v59 }
 0x325   : > { %2895 = vmatpush3.bf16.msra.mxu0 %v2892_v59 }
 0x326   : > { %2897 = vmatprep.subr.bf16.mxu0 %v2896_v0 }
 0x3f3   : > { %v3375_v7 = vpop.f32.mrb[8].mxu0 }
 0x3f4   : > { %v1269_v8 = vpop.f32.mrb[9].mxu0 }
 0x3f5   : > { %2644 = vmatprep.mubr.msk.f32.mxu0 %vm452_vm2, %v1269_v8  ;;  %2677 = vmatprep.mubr.msk.f32.mxu1 %vm452_vm2, %v1269_v8 }
 0x3f6   : > { %2645 = vmatmul.mubr.msk.f32.vlgmr.msra.gmra.mrb[10].mxu0 %vm452_vm2, %v3375_v7  ;;  %2678 = vmatmul.mubr.msk.f32.vlgmr.msra.gmra.mrb[14].mxu1 %vm452_vm2, %v3375_v7 }
 0x3f7   : > { %2899 = vmatpush3.bf16.msra.mxu0 %v2896_v0  ;;  %2931 = vmatpush3.bf16.msra.mxu1 %v2928_v2  ;;  %v1925_v0 = vld [vmem:[#allocation4 + $0x20] sm:$0xff] }
 0x3f8   : > { %2655 = vmatprep.mubr.msk.f32.mxu0 %vm452_vm2, %v1269_v8  ;;  %2699 = vmatprep.mubr.msk.f32.mxu1 %vm452_vm2, %v1269_v8 }
 0x3f9   : > { %2901 = vmatprep.subr.bf16.mxu0 %v2900_v10  ;;  %2933 = vmatprep.subr.bf16.mxu1 %v2932_v11 }
 0x3fb   : > { %2903 = vmatpush3.bf16.msra.mxu0 %v2900_v10  ;;  %2935 = vmatpush3.bf16.msra.mxu1 %v2932_v11 }
 0x3fc   : > { %2905 = vmatprep.subr.bf16.mxu0 %v2904_v15  ;;  %2945 = vmatprep.subr.bf16.mxu1 %v2944_v16 }
 0x3fe   : > { %2656 = vmatmul.mubr.msk.f32.vlgmr.msra.gmra.mrb[12].mxu0 %vm452_vm2, %v3375_v7  ;;  %2700 = vmatmul.mubr.msk.f32.vlgmr.msra.gmra.mrb[16].mxu1 %vm452_vm2, %v3375_v7 }
 0x3ff   : > { %2907 = vmatpush3.bf16.msra.mxu0 %v2904_v15  ;;  %2666 = vmatprep.mubr.msk.f32.mxu0 %vm452_vm2, %v1269_v8 }
 0x400   : > { %2947 = vmatpush3.bf16.msra.mxu1 %v2944_v16  ;;  %2721 = vmatprep.mubr.msk.f32.mxu1 %vm452_vm2, %v1269_v8  ;;  %v2097_v16 = vld [vmem:[%s3443_s7] sm:$0xff] }
 0x401   : > { %2909 = vmatprep.subr.bf16.mxu0 %v2908_v25  ;;  %2949 = vmatprep.subr.bf16.mxu1 %v2948_v26  ;;  %v2992_v20 = vpack.c.bf16 %v2098_v17, %v2097_v16 }
 0x403   : > { %2911 = vmatpush3.bf16.msra.mxu0 %v2908_v25  ;;  %v2099_v25 = vld [vmem:[%s3443_s7 + $0x10] sm:$0xff] }
 0x404   : > { %2951 = vmatpush3.bf16.msra.mxu1 %v2948_v26  ;;  %2921 = vmatprep.subr.bf16.mxu0 %v2920_v29  ;;  %v2100_v26 = vld [vmem:[%s3443_s7 + $0x18] sm:$0xff] }
 0x405   : > { %v2996_v27 = vpack.c.bf16 %v2100_v26, %v2099_v25 }
 0x406   : > { %2667 = vmatmul.mubr.msk.f32.vlgmr.msra.gmra.mrb[14].mxu0 %vm452_vm2, %v3375_v7 }
 0x407   : > { %2722 = vmatmul.mubr.msk.f32.vlgmr.msra.gmra.mrb[18].mxu1 %vm452_vm2, %v3375_v7  ;;  %2923 = vmatpush3.bf16.msra.mxu0 %v2920_v29 }
 0x408   : > { %2688 = vmatprep.mubr.msk.f32.mxu0 %vm452_vm2, %v1269_v8  ;;  %2925 = vmatprep.subr.bf16.mxu0 %v2924_v32 }
 0x409   : > { %2770 = vmatprep.mubr.msk.f32.mxu1 %vm452_vm2, %v3364_v24 }
 0x40b   : > { %2927 = vmatpush3.bf16.msra.mxu0 %v2924_v32 }
 0x40c   : > { %2937 = vmatprep.subr.bf16.mxu0 %v2936_v35 }
 0x40e   : > { %2689 = vmatmul.mubr.msk.f32.vlgmr.msra.gmra.mrb[16].mxu0 %vm452_vm2, %v3375_v7 }
 0x40f   : > { %2939 = vmatpush3.bf16.msra.mxu0 %v2936_v35  ;;  %2710 = vmatprep.mubr.msk.f32.mxu0 %vm452_vm2, %v1269_v8 }
 0x410   : > { %2941 = vmatprep.subr.bf16.mxu0 %v2940_v38 }
 0x413   : > { %2943 = vmatpush3.bf16.msra.mxu0 %v2940_v38 }
 0x416   : > { %2711 = vmatmul.mubr.msk.f32.vlgmr.msra.gmra.mrb[18].mxu0 %vm452_vm2, %v3375_v7  ;;  %v1927_v7 = vld [vmem:[#allocation4 + $0x30] sm:$0xff] }
 0x417   : > { %2756 = vmatprep.mubr.f32.mxu0 %v3349_v60 }
 0x4c9   : > { %v2646_v39 = vpop.f32.mrb[10].mxu0  ;;  %v2679_v40 = vpop.f32.mrb[14].mxu1 }
 0x4ca   : > { %v1355_v41 = vpop.f32.mrb[11].mxu0  ;;  %v1595_v24 = vpop.f32.mrb[15].mxu1 }
 0x4cb   : > { %v2952_v42 = vpack.c.bf16 %v2646_v39, %v1355_v41  ;;  %v2964_v43 = vpack.c.bf16 %v2679_v40, %v1595_v24 }
 0x4cd   : > { %2953 = vmatprep.subr.bf16.mxu0 %v2952_v42 }
 0x4ce   : > { %2955 = vmatpush3.bf16.msra.mxu0 %v2952_v42 }
 0x4d1   : > { %v2657_v44 = vpop.f32.mrb[12].mxu0  ;;  %v2701_v45 = vpop.f32.mrb[16].mxu1 }
 0x4d2   : > { %v1435_v46 = vpop.f32.mrb[13].mxu0  ;;  %v1755_v47 = vpop.f32.mrb[17].mxu1 }
 0x4d3   : > { %v2956_v48 = vpack.c.bf16 %v2657_v44, %v1435_v46  ;;  %v2972_v49 = vpack.c.bf16 %v2701_v45, %v1755_v47 }
 0x4d5   : > { %2957 = vmatprep.subr.bf16.mxu0 %v2956_v48 }
 0x4d6   : > { %2959 = vmatpush3.bf16.msra.mxu0 %v2956_v48 }
 0x4d9   : > { %v2668_v50 = vpop.f32.mrb[14].mxu0 }
 0x4da   : > { %v2723_v51 = vpop.f32.mrb[18].mxu1  ;;  %v1515_v52 = vpop.f32.mrb[15].mxu0 }
 0x4db   : > { %v2960_v60 = vpack.c.bf16 %v2668_v50, %v1515_v52  ;;  %v1915_v53 = vpop.f32.mrb[19].mxu1 }
 0x4dc   : > { %v2980_v54 = vpack.c.bf16 %v2723_v51, %v1915_v53 }
 0x4dd   : > { %2961 = vmatprep.subr.bf16.mxu0 %v2960_v60 }
 0x4de   : > { %2963 = vmatpush3.bf16.msra.mxu0 %v2960_v60 }
 0x4df   : > { %2965 = vmatprep.subr.bf16.mxu0 %v2964_v43 }
 0x4e1   : > { %v2690_v55 = vpop.f32.mrb[16].mxu0 }
 0x4e2   : > { %v1675_v56 = vpop.f32.mrb[17].mxu0  ;;  %2967 = vmatpush3.bf16.msra.mxu0 %v2964_v43 }
 0x4e3   : > { %v2968_v57 = vpack.c.bf16 %v2690_v55, %v1675_v56 }
 0x4e5   : > { %2969 = vmatprep.subr.bf16.mxu0 %v2968_v57 }
 0x4e6   : > { %2971 = vmatpush3.bf16.msra.mxu0 %v2968_v57 }
 0x4e7   : > { %2973 = vmatprep.subr.bf16.mxu0 %v2972_v49 }
 0x4e9   : > { %v2712_v59 = vpop.f32.mrb[18].mxu0 }
 0x4ea   : > { %v1835_v61 = vpop.f32.mrb[19].mxu0  ;;  %2975 = vmatpush3.bf16.msra.mxu0 %v2972_v49 }
 0x4eb   : > { %v2976_v62 = vpack.c.bf16 %v2712_v59, %v1835_v61 }
 0x4ed   : > { %2977 = vmatprep.subr.bf16.mxu0 %v2976_v62 }
 0x4ee   : > { %2979 = vmatpush3.bf16.msra.mxu0 %v2976_v62 }
 0x4ef   : > { %2981 = vmatprep.subr.bf16.mxu0 %v2980_v54 }
 0x4f2   : > { %2983 = vmatpush3.bf16.msra.mxu0 %v2980_v54 }
 0x4f5   : > { %2757 = vmatmul.mubr.f32.vlgmr.msra.gmra.mrb[20].mxu0 %v3352_v21 }
 0x4f6   : > { %2759 = vmatprep.mubr.f32.mxu0 %v3354_v22 }
 0x4f9   : > { %2760 = vmatmul.mubr.f32.gmra.mrb[22].mxu0 %v3358_v23 }
 0x5c8   : > { %v2758_v1 = vpop.f32.mrb[20].mxu0 }
 0x5c9   : > { %v2001_v2 = vadd.f32 %v2758_v1, %v1926_v63  ;;  %v1995_v3 = vpop.f32.mrb[21].mxu0 }
 0x5ca   : > { %v1996_v4 = vadd.f32 %v1995_v3, %v1925_v0 }
 0x5cb   : > { %v2015_v6 = vmul.f32 0.01, %v2001_v2 }
 0x5cc   : > { %v2014_v8 = vmul.f32 0.01, %v1996_v4  ;;  %v2761_v9 = vpop.f32.mrb[22].mxu0 }
 0x5cd   : > { %v2019_v10 = vmax.f32 %v2001_v2, %v2015_v6  ;;  %v2011_v11 = vadd.f32 %v2761_v9, %v1928_v5  ;;  %v2005_v12 = vpop.f32.mrb[23].mxu0 }
 0x5ce   : > { %v2018_v13 = vmax.f32 %v1996_v4, %v2014_v8  ;;  %v2006_v21 = vadd.f32 %v2005_v12, %v1927_v7 }
 0x5cf   : > { %v2017_v14 = vmul.f32 0.01, %v2011_v11 }
 0x5d0   : > { %v2016_v22 = vmul.f32 0.01, %v2006_v21  ;;  %v2984_v15 = vpack.c.bf16 %v2019_v10, %v2018_v13 }
 0x5d1   : > { %v2021_v23 = vmax.f32 %v2011_v11, %v2017_v14 }
 0x5d2   : > { %v2020_v18 = vmax.f32 %v2006_v21, %v2016_v22  ;;  %2985 = vmatprep.subr.bf16.mxu1 %v2984_v15 }
 0x5d3   : > { %2987 = vmatpush3.bf16.msra.mxu1 %v2984_v15 }
 0x5d4   : > { %v2988_v19 = vpack.c.bf16 %v2021_v23, %v2020_v18 }
 0x5d6   : > { %2989 = vmatprep.subr.bf16.mxu1 %v2988_v19 }
 0x5d7   : > { %2991 = vmatpush3.bf16.msra.mxu1 %v2988_v19 }
 0x5d8   : > { %2993 = vmatprep.subr.bf16.mxu1 %v2992_v20 }
 0x5da   : > { %2771 = vmatmul.mubr.msk.f32.vlgmr.msra.gmra.mrb[20].mxu1 %vm452_vm2, %v3371_v58 }
 0x5db   : > { %2995 = vmatpush3.bf16.msra.mxu1 %v2992_v20 }
 0x5dc   : > { %2997 = vmatprep.subr.bf16.mxu1 %v2996_v27 }
 0x5df   : > { %2999 = vmatpush3.bf16.msra.mxu1 %v2996_v27 }
 0x6ad   : > { %v2772_v28 = vpop.f32.mrb[20].mxu1 }
 0x6ae   : > { %v2088_v29 = vpop.f32.mrb[21].mxu1 }
 0x6af   : > { %2781 = vmatprep.mubr.msk.f32.mxu1 %vm452_vm2, %v2088_v29 }
 0x6b0   : > { %2782 = vmatmul.mubr.msk.f32.vlgmr.msra.gmra.mrb[22].mxu1 %vm452_vm2, %v2772_v28 }
 0x783   : > { %v2783_v31 = vpop.f32.mrb[22].mxu1 }
 0x784   : > { %v2184_v58 = vadd.f32 %v2783_v31, %v2330_v30  ;;  %v2178_v32 = vpop.f32.mrb[23].mxu1 }
 0x785   : > { %v2179_v33 = vadd.f32 %v2330_v30, %v2178_v32 }
 0x786   : > { %2188 = vst.msk [vmem:[%s349_s25 + $0x8] sm:$0xff] %vm452_vm2, %v2184_v58 }
 0x787   : > { %2187 = vst.msk [vmem:[%s349_s25] sm:$0xff] %vm452_vm2, %v2179_v33 }
 0x788 PF: > { %s20_s27 = sadd.s32 1, %s3139_s27  }
 0x789   : > { %p17_p5 = scmp.ge.s32.totalorder %s20_s27, 4  }
 0x78b   :  { %19 = sbr.rel (!%p17_p5) target bundleno = 2 (0x2), region = 111 }
 0x792   :  { %2210 = vsyncpa [#allocation3], 1 }
 0x793   :  { %2212 = vsyncpa [#allocation3 + $0x1], 1 }
 0x794   :  { %2213 = vsyncpa [#allocation5], 1 }

</bundles_post_ra>
